<compile_context>
chip_gen: v7x
topology: tpu7x:2x2x1
jax: 0.10.0
libtpu: 0.0.40
codegen_flags: <defaults>
</compile_context>

<pallas_src>
import functools

import jax
import jax.numpy as jnp
from jax import lax
from jax.experimental import pallas as pl
from jax.experimental.pallas import tpu as pltpu

_LANE = 128
_SUBLANE = 8


def _round_up(n, m):
    return ((n + m - 1) // m) * m


def fused_nn_kernel(x_ref, w_ref, p_ref, bits_ref, o_ref, *,
                    out_dims, p_drop, n_batch):
    """All layers fused: (Linear -> ReLU -> BN(train) -> LN -> Dropout) x nlayers.

    x_ref:    (Bp, Dp)      f32 lane-padded activations (padding lanes are 0)
    w_ref:    (L, Dp, Dp)   f32 W.T per layer, zero-padded
    p_ref:    (L, 5, Dp)    f32 rows = [bias, bn_gamma, bn_beta, ln_gamma, ln_beta],
                            zero outside each layer's true out_dim (ln_gamma doubles
                            as the lane mask that re-zeroes padded lanes after LN)
    bits_ref: (L, Bp, Dp)   u32 dropout random bits
    o_ref:    (Bp, Dp)      f32
    """
    h = x_ref[...]
    b_pad = h.shape[0]
    inv_b = 1.0 / float(n_batch)
    batch_padded = b_pad != n_batch
    if batch_padded:
        row_mask = (lax.broadcasted_iota(jnp.int32, (b_pad, 1), 0)
                    < n_batch).astype(jnp.float32)

    inv_keep = 1.0 / (1.0 - p_drop) if p_drop < 1.0 else 0.0
    thresh = jnp.uint32(min(int(round(p_drop * 4294967296.0)), 4294967295))

    # nlayers is small & static: unroll in Python, activations stay in vregs/VMEM.
    for l, d_out in enumerate(out_dims):
        w = w_ref[l]                         # (Dp, Dp)
        prm = p_ref[l]                       # (5, Dp)
        b = prm[0:1, :]
        bn_g = prm[1:2, :]
        bn_b = prm[2:3, :]
        ln_g = prm[3:4, :]
        ln_b = prm[4:5, :]

        # ---- Linear + ReLU (bf16 into the MXU, f32 accumulation) ----
        acc = jnp.dot(h.astype(jnp.bfloat16), w.astype(jnp.bfloat16),
                      preferred_element_type=jnp.float32)
        h = jnp.maximum(acc + b, 0.0)        # padded lanes stay exactly 0

        # ---- BatchNorm1d (training): per-feature stats over batch, biased var ----
        if batch_padded:
            hm = h * row_mask
            bn_mean = jnp.sum(hm, axis=0, keepdims=True) * inv_b
            bn_msq = jnp.sum(hm * h, axis=0, keepdims=True) * inv_b
        else:
            bn_mean = jnp.sum(h, axis=0, keepdims=True) * inv_b
            bn_msq = jnp.sum(h * h, axis=0, keepdims=True) * inv_b
        bn_var = jnp.maximum(bn_msq - bn_mean * bn_mean, 0.0)
        h = (h - bn_mean) * lax.rsqrt(bn_var + 1e-5)
        h = h * bn_g + bn_b                  # padded lanes still 0 (gamma/beta pad = 0)

        # ---- LayerNorm: per-row stats over the layer's true feature count ----
        inv_d = 1.0 / float(d_out)
        ln_mean = jnp.sum(h, axis=-1, keepdims=True) * inv_d   # pad lanes contribute 0
        ln_msq = jnp.sum(h * h, axis=-1, keepdims=True) * inv_d
        ln_var = jnp.maximum(ln_msq - ln_mean * ln_mean, 0.0)
        h = (h - ln_mean) * lax.rsqrt(ln_var + 1e-5)
        h = h * ln_g + ln_b                  # ln_g == 0 on padded lanes -> re-zero padding

        # ---- Dropout (training): integer-space compare, folded keep-scale ----
        if p_drop > 0.0:
            bits = bits_ref[l]               # (Bp, Dp) u32
            h = jnp.where(bits >= thresh, h * inv_keep, 0.0)

    o_ref[...] = h.astype(o_ref.dtype)


def init_params(key, ninput, nhidden, noutput, nlayers):
    """Deterministic parameter init matching the PyTorch module's shapes."""
    params = []
    for l in range(nlayers):
        in_dim = ninput if l == 0 else nhidden[l - 1]
        out_dim = nhidden[l] if l != nlayers - 1 else noutput
        key, kw, kb = jax.random.split(key, 3)
        bound = 1.0 / float(in_dim) ** 0.5
        # torch Linear weight is (out, in); keep transposed (in, out) for the kernel
        w_t = jax.random.uniform(kw, (in_dim, out_dim), jnp.float32, -bound, bound)
        b = jax.random.uniform(kb, (out_dim,), jnp.float32, -bound, bound)
        bn_g = jnp.ones((out_dim,), jnp.float32)
        bn_b = jnp.zeros((out_dim,), jnp.float32)
        ln_g = jnp.ones((out_dim,), jnp.float32)
        ln_b = jnp.zeros((out_dim,), jnp.float32)
        params.append((w_t, b, bn_g, bn_b, ln_g, ln_b))
    return params


def nn_forward(x, params, p_drop=0.3, rng_key=None):
    nlayers = len(params)
    batch, ninput = x.shape
    dims = [ninput] + [w_t.shape[1] for (w_t, *_rest) in params]
    d_pad = max(_round_up(d, _LANE) for d in dims)
    b_pad = _round_up(batch, _SUBLANE)

    # One contiguous, lane-padded slab per operand kind (cuts tiny-param DMA setup).
    w_stack = jnp.zeros((nlayers, d_pad, d_pad), jnp.float32)
    p_stack = jnp.zeros((nlayers, 5, d_pad), jnp.float32)
    for l, (w_t, b, bn_g, bn_b, ln_g, ln_b) in enumerate(params):
        in_dim, out_dim = w_t.shape
        w_stack = w_stack.at[l, :in_dim, :out_dim].set(w_t)
        p_stack = p_stack.at[l, 0, :out_dim].set(b)
        p_stack = p_stack.at[l, 1, :out_dim].set(bn_g)
        p_stack = p_stack.at[l, 2, :out_dim].set(bn_b)
        p_stack = p_stack.at[l, 3, :out_dim].set(ln_g)
        p_stack = p_stack.at[l, 4, :out_dim].set(ln_b)

    x_pad = jnp.zeros((b_pad, d_pad), jnp.float32).at[:batch, :ninput].set(x)

    if rng_key is None:
        rng_key = jax.random.PRNGKey(0)
    bits = jax.random.bits(rng_key, (nlayers, b_pad, d_pad), dtype=jnp.uint32)

    out_dims = tuple(w_t.shape[1] for (w_t, *_rest) in params)
    kernel = functools.partial(fused_nn_kernel, out_dims=out_dims,
                               p_drop=float(p_drop), n_batch=batch)
    vmem = pl.BlockSpec(memory_space=pltpu.MemorySpace.VMEM)
    out_padded = pl.pallas_call(
        kernel,
        out_shape=jax.ShapeDtypeStruct((b_pad, d_pad), jnp.float32),
        in_specs=[vmem, vmem, vmem, vmem],
        out_specs=vmem,
    )(x_pad, w_stack, p_stack, bits)
    return out_padded[:batch, :out_dims[-1]]


if __name__ == "__main__":
    # small shapes consistent with the module
    batch = 8
    ninput = 16
    nhidden = [32, 32]
    noutput = 16
    nlayers = 3
    dropout = 0.3

    key = jax.random.PRNGKey(0)
    key, kx, kd = jax.random.split(key, 3)
    x = jax.random.normal(kx, (batch, ninput), jnp.float32)

    params = init_params(key, ninput, nhidden, noutput, nlayers)

    out = nn_forward(x, params, p_drop=dropout, rng_key=kd)
    out = jax.block_until_ready(out)

    assert out.shape == (batch, noutput), out.shape
    assert bool(jnp.all(jnp.isfinite(out)))
    print("KERNEL_OK")
</pallas_src>

<mosaic_0001>
module attributes {stable_mosaic.version = 11 : i64} {
  func.func @fused_nn_kernel(%arg0: memref<8x128xf32, #tpu.memory_space<vmem>>, %arg1: memref<3x128x128xf32, #tpu.memory_space<vmem>>, %arg2: memref<3x5x128xf32, #tpu.memory_space<vmem>>, %arg3: memref<3x8x128xi32, #tpu.memory_space<vmem>>, %arg4: memref<8x128xf32, #tpu.memory_space<vmem>>) attributes {dimension_semantics = [], scalar_prefetch = 0 : i64, scratch_operands = 0 : i64, tpu.core_type = #tpu.core_type<tc>} {
    %c0 = arith.constant 0 : index
    %c0_0 = arith.constant 0 : index
    %0 = vector.load %arg0[%c0, %c0_0] : memref<8x128xf32, #tpu.memory_space<vmem>>, vector<8x128xf32>
    %c0_1 = arith.constant 0 : index
    %c0_2 = arith.constant 0 : index
    %c0_3 = arith.constant 0 : index
    %1 = vector.load %arg1[%c0_1, %c0_2, %c0_3] : memref<3x128x128xf32, #tpu.memory_space<vmem>>, vector<1x128x128xf32>
    %2 = vector.shape_cast %1 : vector<1x128x128xf32> to vector<128x128xf32>
    %c0_4 = arith.constant 0 : index
    %c0_5 = arith.constant 0 : index
    %c0_6 = arith.constant 0 : index
    %3 = vector.load %arg2[%c0_4, %c0_5, %c0_6] : memref<3x5x128xf32, #tpu.memory_space<vmem>>, vector<1x5x128xf32>
    %4 = vector.shape_cast %3 : vector<1x5x128xf32> to vector<5x128xf32>
    %5 = vector.extract_strided_slice %4 {offsets = [0, 0], sizes = [1, 128], strides = [1, 1]} : vector<5x128xf32> to vector<1x128xf32>
    %6 = vector.extract_strided_slice %4 {offsets = [1, 0], sizes = [1, 128], strides = [1, 1]} : vector<5x128xf32> to vector<1x128xf32>
    %7 = vector.extract_strided_slice %4 {offsets = [2, 0], sizes = [1, 128], strides = [1, 1]} : vector<5x128xf32> to vector<1x128xf32>
    %8 = vector.extract_strided_slice %4 {offsets = [3, 0], sizes = [1, 128], strides = [1, 1]} : vector<5x128xf32> to vector<1x128xf32>
    %9 = vector.extract_strided_slice %4 {offsets = [4, 0], sizes = [1, 128], strides = [1, 1]} : vector<5x128xf32> to vector<1x128xf32>
    %10 = arith.truncf %0 : vector<8x128xf32> to vector<8x128xbf16>
    %11 = arith.truncf %2 : vector<128x128xf32> to vector<128x128xbf16>
    %cst = arith.constant dense<0.000000e+00> : vector<8x128xf32>
    %12 = tpu.matmul %10, %11, %cst {dimension_numbers = #tpu.dot_dimension_numbers<[1], [0], [0], [1], [0, 0, 1, 1], [], []>} : vector<8x128xbf16>, vector<128x128xbf16>, vector<8x128xf32> -> vector<8x128xf32>
    %13 = vector.broadcast %5 : vector<1x128xf32> to vector<8x128xf32>
    %14 = arith.addf %12, %13 : vector<8x128xf32>
    %cst_7 = arith.constant 0.000000e+00 : f32
    %15 = vector.broadcast %cst_7 : f32 to vector<8x128xf32>
    %16 = arith.maximumf %14, %15 : vector<8x128xf32>
    %cst_8 = arith.constant dense<0.000000e+00> : vector<128xf32>
    %17 = vector.multi_reduction <add>, %16, %cst_8 [0] : vector<8x128xf32> to vector<128xf32>
    %18 = vector.shape_cast %17 : vector<128xf32> to vector<1x128xf32>
    %cst_9 = arith.constant 1.250000e-01 : f32
    %19 = vector.broadcast %cst_9 : f32 to vector<1x128xf32>
    %20 = arith.mulf %18, %19 : vector<1x128xf32>
    %21 = arith.mulf %16, %16 : vector<8x128xf32>
    %cst_10 = arith.constant dense<0.000000e+00> : vector<128xf32>
    %22 = vector.multi_reduction <add>, %21, %cst_10 [0] : vector<8x128xf32> to vector<128xf32>
    %23 = vector.shape_cast %22 : vector<128xf32> to vector<1x128xf32>
    %cst_11 = arith.constant 1.250000e-01 : f32
    %24 = vector.broadcast %cst_11 : f32 to vector<1x128xf32>
    %25 = arith.mulf %23, %24 : vector<1x128xf32>
    %26 = arith.mulf %20, %20 : vector<1x128xf32>
    %27 = arith.subf %25, %26 : vector<1x128xf32>
    %cst_12 = arith.constant 0.000000e+00 : f32
    %28 = vector.broadcast %cst_12 : f32 to vector<1x128xf32>
    %29 = arith.maximumf %27, %28 : vector<1x128xf32>
    %30 = vector.broadcast %20 : vector<1x128xf32> to vector<8x128xf32>
    %31 = arith.subf %16, %30 : vector<8x128xf32>
    %cst_13 = arith.constant 9.99999974E-6 : f32
    %32 = vector.broadcast %cst_13 : f32 to vector<1x128xf32>
    %33 = arith.addf %29, %32 : vector<1x128xf32>
    %34 = math.rsqrt %33 : vector<1x128xf32>
    %35 = vector.broadcast %34 : vector<1x128xf32> to vector<8x128xf32>
    %36 = arith.mulf %31, %35 : vector<8x128xf32>
    %37 = vector.broadcast %6 : vector<1x128xf32> to vector<8x128xf32>
    %38 = arith.mulf %36, %37 : vector<8x128xf32>
    %39 = vector.broadcast %7 : vector<1x128xf32> to vector<8x128xf32>
    %40 = arith.addf %38, %39 : vector<8x128xf32>
    %cst_14 = arith.constant dense<0.000000e+00> : vector<8xf32>
    %41 = vector.multi_reduction <add>, %40, %cst_14 [1] : vector<8x128xf32> to vector<8xf32>
    %42 = vector.shape_cast %41 : vector<8xf32> to vector<8x1xf32>
    %cst_15 = arith.constant 3.125000e-02 : f32
    %43 = vector.broadcast %cst_15 : f32 to vector<8x1xf32>
    %44 = arith.mulf %42, %43 : vector<8x1xf32>
    %45 = arith.mulf %40, %40 : vector<8x128xf32>
    %cst_16 = arith.constant dense<0.000000e+00> : vector<8xf32>
    %46 = vector.multi_reduction <add>, %45, %cst_16 [1] : vector<8x128xf32> to vector<8xf32>
    %47 = vector.shape_cast %46 : vector<8xf32> to vector<8x1xf32>
    %cst_17 = arith.constant 3.125000e-02 : f32
    %48 = vector.broadcast %cst_17 : f32 to vector<8x1xf32>
    %49 = arith.mulf %47, %48 : vector<8x1xf32>
    %50 = arith.mulf %44, %44 : vector<8x1xf32>
    %51 = arith.subf %49, %50 : vector<8x1xf32>
    %cst_18 = arith.constant 0.000000e+00 : f32
    %52 = vector.broadcast %cst_18 : f32 to vector<8x1xf32>
    %53 = arith.maximumf %51, %52 : vector<8x1xf32>
    %54 = vector.broadcast %44 : vector<8x1xf32> to vector<8x128xf32>
    %55 = arith.subf %40, %54 : vector<8x128xf32>
    %cst_19 = arith.constant 9.99999974E-6 : f32
    %56 = vector.broadcast %cst_19 : f32 to vector<8x1xf32>
    %57 = arith.addf %53, %56 : vector<8x1xf32>
    %58 = math.rsqrt %57 : vector<8x1xf32>
    %59 = vector.broadcast %58 : vector<8x1xf32> to vector<8x128xf32>
    %60 = arith.mulf %55, %59 : vector<8x128xf32>
    %61 = vector.broadcast %8 : vector<1x128xf32> to vector<8x128xf32>
    %62 = arith.mulf %60, %61 : vector<8x128xf32>
    %63 = vector.broadcast %9 : vector<1x128xf32> to vector<8x128xf32>
    %64 = arith.addf %62, %63 : vector<8x128xf32>
    %c0_20 = arith.constant 0 : index
    %c0_21 = arith.constant 0 : index
    %c0_22 = arith.constant 0 : index
    %65 = vector.load %arg3[%c0_20, %c0_21, %c0_22] : memref<3x8x128xi32, #tpu.memory_space<vmem>>, vector<1x8x128xi32>
    %66 = vector.shape_cast %65 : vector<1x8x128xi32> to vector<8x128xi32>
    %c1288490189_i32 = arith.constant 1288490189 : i32
    %67 = vector.broadcast %c1288490189_i32 : i32 to vector<8x128xi32>
    %68 = arith.cmpi uge, %66, %67 : vector<8x128xi32>
    %cst_23 = arith.constant 1.42857146 : f32
    %69 = vector.broadcast %cst_23 : f32 to vector<8x128xf32>
    %70 = arith.mulf %64, %69 : vector<8x128xf32>
    %cst_24 = arith.constant 0.000000e+00 : f32
    %71 = vector.broadcast %cst_24 : f32 to vector<8x128xf32>
    %72 = arith.select %68, %70, %71 : vector<8x128xi1>, vector<8x128xf32>
    %c1 = arith.constant 1 : index
    %c0_25 = arith.constant 0 : index
    %c0_26 = arith.constant 0 : index
    %73 = vector.load %arg1[%c1, %c0_25, %c0_26] : memref<3x128x128xf32, #tpu.memory_space<vmem>>, vector<1x128x128xf32>
    %74 = vector.shape_cast %73 : vector<1x128x128xf32> to vector<128x128xf32>
    %c1_27 = arith.constant 1 : index
    %c0_28 = arith.constant 0 : index
    %c0_29 = arith.constant 0 : index
    %75 = vector.load %arg2[%c1_27, %c0_28, %c0_29] : memref<3x5x128xf32, #tpu.memory_space<vmem>>, vector<1x5x128xf32>
    %76 = vector.shape_cast %75 : vector<1x5x128xf32> to vector<5x128xf32>
    %77 = vector.extract_strided_slice %76 {offsets = [0, 0], sizes = [1, 128], strides = [1, 1]} : vector<5x128xf32> to vector<1x128xf32>
    %78 = vector.extract_strided_slice %76 {offsets = [1, 0], sizes = [1, 128], strides = [1, 1]} : vector<5x128xf32> to vector<1x128xf32>
    %79 = vector.extract_strided_slice %76 {offsets = [2, 0], sizes = [1, 128], strides = [1, 1]} : vector<5x128xf32> to vector<1x128xf32>
    %80 = vector.extract_strided_slice %76 {offsets = [3, 0], sizes = [1, 128], strides = [1, 1]} : vector<5x128xf32> to vector<1x128xf32>
    %81 = vector.extract_strided_slice %76 {offsets = [4, 0], sizes = [1, 128], strides = [1, 1]} : vector<5x128xf32> to vector<1x128xf32>
    %82 = arith.truncf %72 : vector<8x128xf32> to vector<8x128xbf16>
    %83 = arith.truncf %74 : vector<128x128xf32> to vector<128x128xbf16>
    %cst_30 = arith.constant dense<0.000000e+00> : vector<8x128xf32>
    %84 = tpu.matmul %82, %83, %cst_30 {dimension_numbers = #tpu.dot_dimension_numbers<[1], [0], [0], [1], [0, 0, 1, 1], [], []>} : vector<8x128xbf16>, vector<128x128xbf16>, vector<8x128xf32> -> vector<8x128xf32>
    %85 = vector.broadcast %77 : vector<1x128xf32> to vector<8x128xf32>
    %86 = arith.addf %84, %85 : vector<8x128xf32>
    %cst_31 = arith.constant 0.000000e+00 : f32
    %87 = vector.broadcast %cst_31 : f32 to vector<8x128xf32>
    %88 = arith.maximumf %86, %87 : vector<8x128xf32>
    %cst_32 = arith.constant dense<0.000000e+00> : vector<128xf32>
    %89 = vector.multi_reduction <add>, %88, %cst_32 [0] : vector<8x128xf32> to vector<128xf32>
    %90 = vector.shape_cast %89 : vector<128xf32> to vector<1x128xf32>
    %cst_33 = arith.constant 1.250000e-01 : f32
    %91 = vector.broadcast %cst_33 : f32 to vector<1x128xf32>
    %92 = arith.mulf %90, %91 : vector<1x128xf32>
    %93 = arith.mulf %88, %88 : vector<8x128xf32>
    %cst_34 = arith.constant dense<0.000000e+00> : vector<128xf32>
    %94 = vector.multi_reduction <add>, %93, %cst_34 [0] : vector<8x128xf32> to vector<128xf32>
    %95 = vector.shape_cast %94 : vector<128xf32> to vector<1x128xf32>
    %cst_35 = arith.constant 1.250000e-01 : f32
    %96 = vector.broadcast %cst_35 : f32 to vector<1x128xf32>
    %97 = arith.mulf %95, %96 : vector<1x128xf32>
    %98 = arith.mulf %92, %92 : vector<1x128xf32>
    %99 = arith.subf %97, %98 : vector<1x128xf32>
    %cst_36 = arith.constant 0.000000e+00 : f32
    %100 = vector.broadcast %cst_36 : f32 to vector<1x128xf32>
    %101 = arith.maximumf %99, %100 : vector<1x128xf32>
    %102 = vector.broadcast %92 : vector<1x128xf32> to vector<8x128xf32>
    %103 = arith.subf %88, %102 : vector<8x128xf32>
    %cst_37 = arith.constant 9.99999974E-6 : f32
    %104 = vector.broadcast %cst_37 : f32 to vector<1x128xf32>
    %105 = arith.addf %101, %104 : vector<1x128xf32>
    %106 = math.rsqrt %105 : vector<1x128xf32>
    %107 = vector.broadcast %106 : vector<1x128xf32> to vector<8x128xf32>
    %108 = arith.mulf %103, %107 : vector<8x128xf32>
    %109 = vector.broadcast %78 : vector<1x128xf32> to vector<8x128xf32>
    %110 = arith.mulf %108, %109 : vector<8x128xf32>
    %111 = vector.broadcast %79 : vector<1x128xf32> to vector<8x128xf32>
    %112 = arith.addf %110, %111 : vector<8x128xf32>
    %cst_38 = arith.constant dense<0.000000e+00> : vector<8xf32>
    %113 = vector.multi_reduction <add>, %112, %cst_38 [1] : vector<8x128xf32> to vector<8xf32>
    %114 = vector.shape_cast %113 : vector<8xf32> to vector<8x1xf32>
    %cst_39 = arith.constant 3.125000e-02 : f32
    %115 = vector.broadcast %cst_39 : f32 to vector<8x1xf32>
    %116 = arith.mulf %114, %115 : vector<8x1xf32>
    %117 = arith.mulf %112, %112 : vector<8x128xf32>
    %cst_40 = arith.constant dense<0.000000e+00> : vector<8xf32>
    %118 = vector.multi_reduction <add>, %117, %cst_40 [1] : vector<8x128xf32> to vector<8xf32>
    %119 = vector.shape_cast %118 : vector<8xf32> to vector<8x1xf32>
    %cst_41 = arith.constant 3.125000e-02 : f32
    %120 = vector.broadcast %cst_41 : f32 to vector<8x1xf32>
    %121 = arith.mulf %119, %120 : vector<8x1xf32>
    %122 = arith.mulf %116, %116 : vector<8x1xf32>
    %123 = arith.subf %121, %122 : vector<8x1xf32>
    %cst_42 = arith.constant 0.000000e+00 : f32
    %124 = vector.broadcast %cst_42 : f32 to vector<8x1xf32>
    %125 = arith.maximumf %123, %124 : vector<8x1xf32>
    %126 = vector.broadcast %116 : vector<8x1xf32> to vector<8x128xf32>
    %127 = arith.subf %112, %126 : vector<8x128xf32>
    %cst_43 = arith.constant 9.99999974E-6 : f32
    %128 = vector.broadcast %cst_43 : f32 to vector<8x1xf32>
    %129 = arith.addf %125, %128 : vector<8x1xf32>
    %130 = math.rsqrt %129 : vector<8x1xf32>
    %131 = vector.broadcast %130 : vector<8x1xf32> to vector<8x128xf32>
    %132 = arith.mulf %127, %131 : vector<8x128xf32>
    %133 = vector.broadcast %80 : vector<1x128xf32> to vector<8x128xf32>
    %134 = arith.mulf %132, %133 : vector<8x128xf32>
    %135 = vector.broadcast %81 : vector<1x128xf32> to vector<8x128xf32>
    %136 = arith.addf %134, %135 : vector<8x128xf32>
    %c1_44 = arith.constant 1 : index
    %c0_45 = arith.constant 0 : index
    %c0_46 = arith.constant 0 : index
    %137 = vector.load %arg3[%c1_44, %c0_45, %c0_46] : memref<3x8x128xi32, #tpu.memory_space<vmem>>, vector<1x8x128xi32>
    %138 = vector.shape_cast %137 : vector<1x8x128xi32> to vector<8x128xi32>
    %c1288490189_i32_47 = arith.constant 1288490189 : i32
    %139 = vector.broadcast %c1288490189_i32_47 : i32 to vector<8x128xi32>
    %140 = arith.cmpi uge, %138, %139 : vector<8x128xi32>
    %cst_48 = arith.constant 1.42857146 : f32
    %141 = vector.broadcast %cst_48 : f32 to vector<8x128xf32>
    %142 = arith.mulf %136, %141 : vector<8x128xf32>
    %cst_49 = arith.constant 0.000000e+00 : f32
    %143 = vector.broadcast %cst_49 : f32 to vector<8x128xf32>
    %144 = arith.select %140, %142, %143 : vector<8x128xi1>, vector<8x128xf32>
    %c2 = arith.constant 2 : index
    %c0_50 = arith.constant 0 : index
    %c0_51 = arith.constant 0 : index
    %145 = vector.load %arg1[%c2, %c0_50, %c0_51] : memref<3x128x128xf32, #tpu.memory_space<vmem>>, vector<1x128x128xf32>
    %146 = vector.shape_cast %145 : vector<1x128x128xf32> to vector<128x128xf32>
    %c2_52 = arith.constant 2 : index
    %c0_53 = arith.constant 0 : index
    %c0_54 = arith.constant 0 : index
    %147 = vector.load %arg2[%c2_52, %c0_53, %c0_54] : memref<3x5x128xf32, #tpu.memory_space<vmem>>, vector<1x5x128xf32>
    %148 = vector.shape_cast %147 : vector<1x5x128xf32> to vector<5x128xf32>
    %149 = vector.extract_strided_slice %148 {offsets = [0, 0], sizes = [1, 128], strides = [1, 1]} : vector<5x128xf32> to vector<1x128xf32>
    %150 = vector.extract_strided_slice %148 {offsets = [1, 0], sizes = [1, 128], strides = [1, 1]} : vector<5x128xf32> to vector<1x128xf32>
    %151 = vector.extract_strided_slice %148 {offsets = [2, 0], sizes = [1, 128], strides = [1, 1]} : vector<5x128xf32> to vector<1x128xf32>
    %152 = vector.extract_strided_slice %148 {offsets = [3, 0], sizes = [1, 128], strides = [1, 1]} : vector<5x128xf32> to vector<1x128xf32>
    %153 = vector.extract_strided_slice %148 {offsets = [4, 0], sizes = [1, 128], strides = [1, 1]} : vector<5x128xf32> to vector<1x128xf32>
    %154 = arith.truncf %144 : vector<8x128xf32> to vector<8x128xbf16>
    %155 = arith.truncf %146 : vector<128x128xf32> to vector<128x128xbf16>
    %cst_55 = arith.constant dense<0.000000e+00> : vector<8x128xf32>
    %156 = tpu.matmul %154, %155, %cst_55 {dimension_numbers = #tpu.dot_dimension_numbers<[1], [0], [0], [1], [0, 0, 1, 1], [], []>} : vector<8x128xbf16>, vector<128x128xbf16>, vector<8x128xf32> -> vector<8x128xf32>
    %157 = vector.broadcast %149 : vector<1x128xf32> to vector<8x128xf32>
    %158 = arith.addf %156, %157 : vector<8x128xf32>
    %cst_56 = arith.constant 0.000000e+00 : f32
    %159 = vector.broadcast %cst_56 : f32 to vector<8x128xf32>
    %160 = arith.maximumf %158, %159 : vector<8x128xf32>
    %cst_57 = arith.constant dense<0.000000e+00> : vector<128xf32>
    %161 = vector.multi_reduction <add>, %160, %cst_57 [0] : vector<8x128xf32> to vector<128xf32>
    %162 = vector.shape_cast %161 : vector<128xf32> to vector<1x128xf32>
    %cst_58 = arith.constant 1.250000e-01 : f32
    %163 = vector.broadcast %cst_58 : f32 to vector<1x128xf32>
    %164 = arith.mulf %162, %163 : vector<1x128xf32>
    %165 = arith.mulf %160, %160 : vector<8x128xf32>
    %cst_59 = arith.constant dense<0.000000e+00> : vector<128xf32>
    %166 = vector.multi_reduction <add>, %165, %cst_59 [0] : vector<8x128xf32> to vector<128xf32>
    %167 = vector.shape_cast %166 : vector<128xf32> to vector<1x128xf32>
    %cst_60 = arith.constant 1.250000e-01 : f32
    %168 = vector.broadcast %cst_60 : f32 to vector<1x128xf32>
    %169 = arith.mulf %167, %168 : vector<1x128xf32>
    %170 = arith.mulf %164, %164 : vector<1x128xf32>
    %171 = arith.subf %169, %170 : vector<1x128xf32>
    %cst_61 = arith.constant 0.000000e+00 : f32
    %172 = vector.broadcast %cst_61 : f32 to vector<1x128xf32>
    %173 = arith.maximumf %171, %172 : vector<1x128xf32>
    %174 = vector.broadcast %164 : vector<1x128xf32> to vector<8x128xf32>
    %175 = arith.subf %160, %174 : vector<8x128xf32>
    %cst_62 = arith.constant 9.99999974E-6 : f32
    %176 = vector.broadcast %cst_62 : f32 to vector<1x128xf32>
    %177 = arith.addf %173, %176 : vector<1x128xf32>
    %178 = math.rsqrt %177 : vector<1x128xf32>
    %179 = vector.broadcast %178 : vector<1x128xf32> to vector<8x128xf32>
    %180 = arith.mulf %175, %179 : vector<8x128xf32>
    %181 = vector.broadcast %150 : vector<1x128xf32> to vector<8x128xf32>
    %182 = arith.mulf %180, %181 : vector<8x128xf32>
    %183 = vector.broadcast %151 : vector<1x128xf32> to vector<8x128xf32>
    %184 = arith.addf %182, %183 : vector<8x128xf32>
    %cst_63 = arith.constant dense<0.000000e+00> : vector<8xf32>
    %185 = vector.multi_reduction <add>, %184, %cst_63 [1] : vector<8x128xf32> to vector<8xf32>
    %186 = vector.shape_cast %185 : vector<8xf32> to vector<8x1xf32>
    %cst_64 = arith.constant 6.250000e-02 : f32
    %187 = vector.broadcast %cst_64 : f32 to vector<8x1xf32>
    %188 = arith.mulf %186, %187 : vector<8x1xf32>
    %189 = arith.mulf %184, %184 : vector<8x128xf32>
    %cst_65 = arith.constant dense<0.000000e+00> : vector<8xf32>
    %190 = vector.multi_reduction <add>, %189, %cst_65 [1] : vector<8x128xf32> to vector<8xf32>
    %191 = vector.shape_cast %190 : vector<8xf32> to vector<8x1xf32>
    %cst_66 = arith.constant 6.250000e-02 : f32
    %192 = vector.broadcast %cst_66 : f32 to vector<8x1xf32>
    %193 = arith.mulf %191, %192 : vector<8x1xf32>
    %194 = arith.mulf %188, %188 : vector<8x1xf32>
    %195 = arith.subf %193, %194 : vector<8x1xf32>
    %cst_67 = arith.constant 0.000000e+00 : f32
    %196 = vector.broadcast %cst_67 : f32 to vector<8x1xf32>
    %197 = arith.maximumf %195, %196 : vector<8x1xf32>
    %198 = vector.broadcast %188 : vector<8x1xf32> to vector<8x128xf32>
    %199 = arith.subf %184, %198 : vector<8x128xf32>
    %cst_68 = arith.constant 9.99999974E-6 : f32
    %200 = vector.broadcast %cst_68 : f32 to vector<8x1xf32>
    %201 = arith.addf %197, %200 : vector<8x1xf32>
    %202 = math.rsqrt %201 : vector<8x1xf32>
    %203 = vector.broadcast %202 : vector<8x1xf32> to vector<8x128xf32>
    %204 = arith.mulf %199, %203 : vector<8x128xf32>
    %205 = vector.broadcast %152 : vector<1x128xf32> to vector<8x128xf32>
    %206 = arith.mulf %204, %205 : vector<8x128xf32>
    %207 = vector.broadcast %153 : vector<1x128xf32> to vector<8x128xf32>
    %208 = arith.addf %206, %207 : vector<8x128xf32>
    %c2_69 = arith.constant 2 : index
    %c0_70 = arith.constant 0 : index
    %c0_71 = arith.constant 0 : index
    %209 = vector.load %arg3[%c2_69, %c0_70, %c0_71] : memref<3x8x128xi32, #tpu.memory_space<vmem>>, vector<1x8x128xi32>
    %210 = vector.shape_cast %209 : vector<1x8x128xi32> to vector<8x128xi32>
    %c1288490189_i32_72 = arith.constant 1288490189 : i32
    %211 = vector.broadcast %c1288490189_i32_72 : i32 to vector<8x128xi32>
    %212 = arith.cmpi uge, %210, %211 : vector<8x128xi32>
    %cst_73 = arith.constant 1.42857146 : f32
    %213 = vector.broadcast %cst_73 : f32 to vector<8x128xf32>
    %214 = arith.mulf %208, %213 : vector<8x128xf32>
    %cst_74 = arith.constant 0.000000e+00 : f32
    %215 = vector.broadcast %cst_74 : f32 to vector<8x128xf32>
    %216 = arith.select %212, %214, %215 : vector<8x128xi1>, vector<8x128xf32>
    %c0_75 = arith.constant 0 : index
    %c0_76 = arith.constant 0 : index
    %217 = vector.load %arg4[%c0_75, %c0_76] : memref<8x128xf32, #tpu.memory_space<vmem>>, vector<8x128xf32>
    tpu.vector_store %arg4[%c0_75, %c0_76], %216 {strides = array<i32>} : memref<8x128xf32, #tpu.memory_space<vmem>>, vector<8x128xf32>,
    return
  }
}

</mosaic_0001>

<bundles_post_ra>
// kernel: tpu_custom_call.1
= control target key start
LH: loop header
LB: loop body
LE: loop exit
PB: predicated region body
PF: predicated region fallthrough
CT: control target
= control target key end

     0   :  { %9 = vsyncpa [#allocation3], 0  ;;  %s764_s0 = inlined_call_operand.vmem [shape: f32[8,128], index: 0, kind: input, shape index: {}]   ;;  %s765_s1 = inlined_call_operand.hbm [shape: f32[3,128,128], index: 1, kind: input, shape index: {}]   ;;  %s766_s2 = inlined_call_operand.vmem [shape: f32[3,5,128], index: 2, kind: input, shape index: {}]   ;;  %s767_s3 = inlined_call_operand.vmem [shape: u32[3,8,128], index: 3, kind: input, shape index: {}]   ;;  %s768_s4 = inlined_call_operand.hbm [shape: f32[8,128], index: 4, kind: output, shape index: {}]  }
   0x1   :  { %10 = vsyncpa [#allocation4], 0  ;;  %s612_s15 = smov [#allocation2]   ;;  %s564_s19 = scalar_lea.hbm %s765_s1, 6144 }
   0x2   :  { %s18_s16 = sshll.u32 %s612_s15, 4  ;;  %p565_p0 = scmp.ne.s32.totalorder %s765_s1, %s564_s19  ;;  %s19_s16 = int_to_ptr.vmem [resolvable:$true] %s18_s16 }
   0x3   :  { %p568_p1 = scmp.lt.u32.totalorder %s564_s19, %s765_s1 }
   0x5   :  { %p570_p2 = pnand %p568_p1, %p565_p0 }
   0x7   :  { %573 = shalt.err (!%p570_p2)
}
   0x8   :  { %s574_s24 = scalar_lea.vmem %s19_s16, 6144  ;;  %p579_p4 = scmp.lt.s32.totalorder %s19_s16, %s19_s16 }
   0x9   :  { %p575_p3 = scmp.ne.s32.totalorder %s19_s16, %s574_s24  ;;  %p580_p5 = scmp.lt.s32.totalorder %s574_s24, %s574_s24 }
   0xb   :  { %p581_p6 = por %p580_p5, %p579_p4 }
   0xd   :  { %p582_p7 = pnand %p581_p6, %p575_p3 }
   0xf   :  { %585 = shalt.err (!%p582_p7)
}
  0x10   :  { %s613_s25 = smov 128   ;;  %s614_s26 = smov 8  }
  0x11   :  { %24 = dma.hbm_to_vmem [thread:$0]  %s765_s1, 6144, %s19_s16, [#allocation3], %s613_s25, %s613_s25, %s614_s26  }
  0x12   :  { %608 = dma.done.wait [#allocation3], 6144  }
  0x13   :  { %609 = vsyncadd [#allocation3], 4294961152  ;;  %v615_v0 = vmov 0.0   ;;  %vm616_vm0 = vmmov 0   ;;  %v34_v1 = vld [vmem:[#allocation2] sm:$0xff]  ;;  %v35_v2 = vld [vmem:[#allocation2 + $0x8] sm:$0xff]  ;;  %v60_v27 = vlaneseq }
  0x14   :  { %486 = vmatprep.subr.bf16.mxu0 %v615_v0  ;;  %502 = vmatprep.mubr.msk.bf16.mxu0 %vm616_vm0, %v615_v0  ;;  %v36_v3 = vld [vmem:[#allocation2 + $0x10] sm:$0xff]  ;;  %v52_v4 = vpack.c.bf16 %v35_v2, %v34_v1  ;;  %v37_v5 = vld [vmem:[#allocation2 + $0x18] sm:$0xff]  ;;  %v38_v7 = vld [vmem:[#allocation2 + $0x20] sm:$0xff]  ;;  %s617_s14 = smov [#allocation5]  }
  0x15   :  { %506 = vmatprep.subr.bf16.mxu1 %v615_v0  ;;  %522 = vmatprep.mubr.msk.bf16.mxu1 %vm616_vm0, %v615_v0  ;;  %v53_v6 = vpack.c.bf16 %v37_v5, %v36_v3  ;;  %v39_v8 = vld [vmem:[#allocation2 + $0x28] sm:$0xff]  ;;  %v40_v10 = vld [vmem:[#allocation2 + $0x30] sm:$0xff]  ;;  %v41_v11 = vld [vmem:[#allocation2 + $0x38] sm:$0xff]  ;;  %v674_v28 = vshrl.u32 %v60_v27, 7  ;;  %s440_s15 = sshll.u32 %s617_s14, 4  ;;  %s441_s15 = int_to_ptr.vmem [resolvable:$true] %s440_s15 }
  0x16   :  { %487 = vmatpush3.bf16.msra.mxu0 %v52_v4  ;;  %v54_v9 = vpack.c.bf16 %v39_v8, %v38_v7  ;;  %v55_v12 = vpack.c.bf16 %v41_v11, %v40_v10  ;;  %v42_v13 = vld [vmem:[#allocation2 + $0x40] sm:$0xff]  ;;  %v43_v14 = vld [vmem:[#allocation2 + $0x48] sm:$0xff]  ;;  %v44_v16 = vld [vmem:[#allocation2 + $0x50] sm:$0xff]  ;;  %s586_s16 = scalar_lea.vmem %s441_s15, 128  ;;  %p591_p9 = scmp.lt.s32.totalorder %s441_s15, %s441_s15 }
  0x17   :  { %488 = vmatprep.subr.bf16.mxu0 %v615_v0  ;;  %v56_v15 = vpack.c.bf16 %v43_v14, %v42_v13  ;;  %v45_v17 = vld [vmem:[#allocation2 + $0x58] sm:$0xff]  ;;  %v46_v19 = vld [vmem:[#allocation2 + $0x60] sm:$0xff]  ;;  %v47_v20 = vld [vmem:[#allocation2 + $0x68] sm:$0xff]  ;;  %v677_v29 = vsub.s32 0, %v674_v28  ;;  %v687_v57 = vsub.s32 1, %v674_v28  ;;  %v690_v58 = vsub.s32 2, %v674_v28  ;;  %p587_p8 = scmp.ne.s32.totalorder %s441_s15, %s586_s16  ;;  %p592_p10 = scmp.lt.s32.totalorder %s586_s16, %s586_s16 }
  0x18   :  { %v57_v18 = vpack.c.bf16 %v45_v17, %v44_v16  ;;  %v58_v21 = vpack.c.bf16 %v47_v20, %v46_v19  ;;  %v48_v22 = vld [vmem:[#allocation2 + $0x70] sm:$0xff]  ;;  %v49_v23 = vld [vmem:[#allocation2 + $0x78] sm:$0xff]  ;;  %v33_v25 = vld [vmem:[%s764_s0] sm:$0xff] }
  0x19   :  { %v59_v24 = vpack.c.bf16 %v49_v23, %v48_v22  ;;  %v51_v26 = vpack.c.bf16 %v33_v25, %v33_v25  ;;  %v682_v30 = vld [vmem:[%s766_s2] sm:$0x1f]  ;;  %v167_v5 = vld [vmem:[#allocation2 + $0x88] sm:$0xff]  ;;  %v168_v7 = vld [vmem:[#allocation2 + $0x90] sm:$0xff]  ;;  %p593_p11 = por %p592_p10, %p591_p9 }
  0x1a   :  { %489 = vmatpush3.bf16.msra.mxu0 %v53_v6  ;;  %v63_v31 = vrot.slane %v682_v30, %v677_v29  ;;  %v130_v60 = vrot.slane %v682_v30, %v687_v57  ;;  %v135_v63 = vrot.slane %v682_v30, %v690_v58  ;;  %v166_v4 = vld [vmem:[#allocation2 + $0x80] sm:$0xff]  ;;  %v169_v8 = vld [vmem:[#allocation2 + $0x98] sm:$0xff]  ;;  %v171_v11 = vld [vmem:[#allocation2 + $0xa8] sm:$0xff] }
  0x1b   :  { %490 = vmatprep.subr.bf16.mxu0 %v615_v0  ;;  %v185_v6 = vpack.c.bf16 %v167_v5, %v166_v4  ;;  %v170_v10 = vld [vmem:[#allocation2 + $0xa0] sm:$0xff]  ;;  %v172_v13 = vld [vmem:[#allocation2 + $0xb0] sm:$0xff]  ;;  %v173_v14 = vld [vmem:[#allocation2 + $0xb8] sm:$0xff]  ;;  %p594_p12 = pnand %p593_p11, %p587_p8 }
  0x1c   :  { %v174_v16 = vld [vmem:[#allocation2 + $0xc0] sm:$0xff]  ;;  %v175_v17 = vld [vmem:[#allocation2 + $0xc8] sm:$0xff]  ;;  %v176_v19 = vld [vmem:[#allocation2 + $0xd0] sm:$0xff] }
  0x1d   :  { %507 = vmatpush3.bf16.msra.mxu1 %v185_v6  ;;  %v177_v20 = vld [vmem:[#allocation2 + $0xd8] sm:$0xff]  ;;  %v178_v22 = vld [vmem:[#allocation2 + $0xe0] sm:$0xff]  ;;  %v179_v23 = vld [vmem:[#allocation2 + $0xe8] sm:$0xff] }
  0x1e   :  { %491 = vmatpush3.bf16.msra.mxu0 %v54_v9  ;;  %508 = vmatprep.subr.bf16.mxu1 %v615_v0  ;;  %v186_v9 = vpack.c.bf16 %v169_v8, %v168_v7  ;;  %v180_v25 = vld [vmem:[#allocation2 + $0xf0] sm:$0xff] }
  0x1f   :  { %492 = vmatprep.subr.bf16.mxu0 %v615_v0 }
  0x21   :  { %509 = vmatpush3.bf16.msra.mxu1 %v186_v9 }
  0x22   :  { %493 = vmatpush3.bf16.msra.mxu0 %v55_v12  ;;  %510 = vmatprep.subr.bf16.mxu1 %v615_v0  ;;  %v187_v12 = vpack.c.bf16 %v171_v11, %v170_v10 }
  0x23   :  { %494 = vmatprep.subr.bf16.mxu0 %v615_v0 }
  0x25   :  { %511 = vmatpush3.bf16.msra.mxu1 %v187_v12 }
  0x26   :  { %495 = vmatpush3.bf16.msra.mxu0 %v56_v15  ;;  %512 = vmatprep.subr.bf16.mxu1 %v615_v0  ;;  %v188_v15 = vpack.c.bf16 %v173_v14, %v172_v13 }
  0x27   :  { %496 = vmatprep.subr.bf16.mxu0 %v615_v0 }
  0x29   :  { %513 = vmatpush3.bf16.msra.mxu1 %v188_v15 }
  0x2a   :  { %497 = vmatpush3.bf16.msra.mxu0 %v57_v18  ;;  %v189_v18 = vpack.c.bf16 %v175_v17, %v174_v16  ;;  %514 = vmatprep.subr.bf16.mxu1 %v615_v0 }
  0x2b   :  { %498 = vmatprep.subr.bf16.mxu0 %v615_v0 }
  0x2d   :  { %515 = vmatpush3.bf16.msra.mxu1 %v189_v18 }
  0x2e   :  { %499 = vmatpush3.bf16.msra.mxu0 %v58_v21  ;;  %v190_v21 = vpack.c.bf16 %v177_v20, %v176_v19  ;;  %516 = vmatprep.subr.bf16.mxu1 %v615_v0 }
  0x2f   :  { %500 = vmatprep.subr.bf16.mxu0 %v615_v0 }
  0x31   :  { %517 = vmatpush3.bf16.msra.mxu1 %v190_v21 }
  0x32   :  { %501 = vmatpush3.bf16.msra.mxu0 %v59_v24  ;;  %v191_v24 = vpack.c.bf16 %v179_v23, %v178_v22  ;;  %518 = vmatprep.subr.bf16.mxu1 %v615_v0  ;;  %v300_v23 = vld [vmem:[#allocation2 + $0x100] sm:$0xff] }
  0x33   :  { %526 = vmatprep.subr.bf16.mxu0 %v615_v0 }
  0x35   :  { %503 = vmatmul.mubr.bf16.vlgmr.msra.gmra.mrb[0].mxu0 %v51_v26  ;;  %v181_v26 = vld [vmem:[#allocation2 + $0xf8] sm:$0xff]  ;;  %519 = vmatpush3.bf16.msra.mxu1 %v191_v24  ;;  %v301_v24 = vld [vmem:[#allocation2 + $0x108] sm:$0xff] }
  0x36   :  { %542 = vmatprep.mubr.msk.bf16.mxu0 %vm616_vm0, %v615_v0  ;;  %v192_v27 = vpack.c.bf16 %v181_v26, %v180_v25  ;;  %520 = vmatprep.subr.bf16.mxu1 %v615_v0  ;;  %v319_v25 = vpack.c.bf16 %v301_v24, %v300_v23  ;;  %v302_v26 = vld [vmem:[#allocation2 + $0x110] sm:$0xff] }
  0x38   :  { %527 = vmatpush3.bf16.msra.mxu0 %v319_v25 }
  0x39   :  { %521 = vmatpush3.bf16.msra.mxu1 %v192_v27  ;;  %528 = vmatprep.subr.bf16.mxu0 %v615_v0  ;;  %v303_v27 = vld [vmem:[#allocation2 + $0x118] sm:$0xff] }
 0x108   :  { %v98_v32 = vpop.f32.mrb[0].mxu0 }
 0x109   :  { %v99_v33 = vadd.f32 %v98_v32, %v63_v31  ;;  %v504_v34 = vpop.f32.mrb[1].mxu0 }
 0x10a   :  { %v101_v35 = vpop.f32.mrb[2].mxu0 }
 0x10b   :  { %v104_v36 = vmax.f32 %v99_v33, 0.0  ;;  %v505_v37 = vpop.f32.mrb[3].mxu0 }
 0x10d   :  { %v105_v38 = vrot.slane %v104_v36, 4  ;;  %v112_v39 = vmul.f32 %v104_v36, %v104_v36 }
 0x10f   :  { %v106_v40 = vadd.f32 %v105_v38, %v104_v36  ;;  %v113_v41 = vrot.slane %v112_v39, 4 }
 0x111   :  { %v107_v42 = vrot.slane %v106_v40, 2  ;;  %v114_v43 = vadd.f32 %v113_v41, %v112_v39  ;;  %v704_v39 = vsub.s32 3, %v674_v28 }
 0x113   :  { %v108_v44 = vadd.f32 %v107_v42, %v106_v40  ;;  %v115_v45 = vrot.slane %v114_v43, 2  ;;  %v707_v40 = vsub.s32 4, %v674_v28  ;;  %v154_v42 = vrot.slane %v682_v30, %v704_v39 }
 0x115   :  { %v109_v46 = vrot.slane %v108_v44, 1  ;;  %v116_v47 = vadd.f32 %v115_v45, %v114_v43  ;;  %v159_v45 = vrot.slane %v682_v30, %v707_v40 }
 0x117   :  { %v110_v48 = vadd.f32 %v109_v46, %v108_v44  ;;  %v117_v49 = vrot.slane %v116_v47, 1  ;;  %v161_v46 = vld [vmem:[%s767_s3] sm:$0xff] }
 0x118   :  { %vm162_vm1 = vcmp.ge.u32.totalorder %v161_v46, 1288490189  ;;  %v312_v46 = vld [vmem:[#allocation2 + $0x160] sm:$0xff] }
 0x119   :  { %v111_v50 = vmul.f32 0.125, %v110_v48  ;;  %v118_v51 = vadd.f32 %v117_v49, %v116_v47  ;;  %vm450_vm2 = vmpackc.low %vm162_vm1, %vm162_vm1 }
 0x11b   :  { %v119_v52 = vmul.f32 0.125, %v118_v51  ;;  %v120_v53 = vmul.f32 %v111_v50, %v111_v50  ;;  %v123_v59 = vsub.f32 %v104_v36, %v111_v50  ;;  %v719_v50 = vld [vmem:[%s766_s2 + $0x8] sm:$0x1f] }
 0x11c   :  { %v196_v51 = vrot.slane %v719_v50, %v677_v29  ;;  %v263_v16 = vrot.slane %v719_v50, %v687_v57  ;;  %v268_v19 = vrot.slane %v719_v50, %v690_v58 }
 0x11d   :  { %v121_v54 = vsub.f32 %v119_v52, %v120_v53 }
 0x11f   :  { %v122_v55 = vmax.f32 %v121_v54, 0.0 }
 0x121   :  { %v124_v56 = vadd.f32 1e-05, %v122_v55 }
 0x123   :  { %552 = vrsqrt.f32 %v124_v56 }
 0x12d   :  { %v553_v61 = vpop.eup %552 }
 0x12e   :  { %v126_v62 = vmul.f32 %v553_v61, %v123_v59 }
 0x130   :  { %v131_v1 = vmul.f32 %v130_v60, %v126_v62 }
 0x132   :  { %v136_v2 = vadd.f32 %v135_v63, %v131_v1 }
 0x134   :  { %137 = vadd.xlane.f32.xlu0 %v136_v2  ;;  %v140_v3 = vmul.f32 %v136_v2, %v136_v2 }
 0x138   :  { %141 = vadd.xlane.f32.xlu0 %v140_v3 }
 0x1c1   :  { %v138_v31 = vpop.xlane.xlu0 %137 }
 0x1c2   :  { %v139_v32 = vmul.f32 0.03125, %v138_v31  ;;  %v320_v31 = vpack.c.bf16 %v303_v27, %v302_v26 }
 0x1c4   :  { %v144_v34 = vmul.f32 %v139_v32, %v139_v32  ;;  %v147_v41 = vsub.f32 %v136_v2, %v139_v32  ;;  %529 = vmatpush3.bf16.msra.mxu0 %v320_v31  ;;  %v304_v32 = vld [vmem:[#allocation2 + $0x120] sm:$0xff] }
 0x1c5   :  { %v142_v33 = vpop.xlane.xlu0 %141  ;;  %530 = vmatprep.subr.bf16.mxu0 %v615_v0 }
 0x1c6   :  { %v143_v35 = vmul.f32 0.03125, %v142_v33  ;;  %v305_v33 = vld [vmem:[#allocation2 + $0x128] sm:$0xff] }
 0x1c8   :  { %v145_v36 = vsub.f32 %v143_v35, %v144_v34  ;;  %v321_v34 = vpack.c.bf16 %v305_v33, %v304_v32  ;;  %v306_v35 = vld [vmem:[#allocation2 + $0x130] sm:$0xff] }
 0x1ca   :  { %v146_v37 = vmax.f32 %v145_v36, 0.0  ;;  %531 = vmatpush3.bf16.msra.mxu0 %v321_v34  ;;  %v307_v36 = vld [vmem:[#allocation2 + $0x138] sm:$0xff] }
 0x1cb   :  { %532 = vmatprep.subr.bf16.mxu0 %v615_v0 }
 0x1cc   :  { %v148_v38 = vadd.f32 1e-05, %v146_v37  ;;  %v322_v37 = vpack.c.bf16 %v307_v36, %v306_v35 }
 0x1ce   :  { %554 = vrsqrt.f32 %v148_v38  ;;  %533 = vmatpush3.bf16.msra.mxu0 %v322_v37  ;;  %v308_v38 = vld [vmem:[#allocation2 + $0x140] sm:$0xff] }
 0x1cf   :  { %534 = vmatprep.subr.bf16.mxu0 %v615_v0 }
 0x1d8   :  { %v555_v43 = vpop.eup %554 }
 0x1d9   :  { %v150_v44 = vmul.f32 %v555_v43, %v147_v41  ;;  %v309_v41 = vld [vmem:[#allocation2 + $0x148] sm:$0xff]  ;;  %v310_v43 = vld [vmem:[#allocation2 + $0x150] sm:$0xff] }
 0x1db   :  { %v155_v47 = vmul.f32 %v154_v42, %v150_v44  ;;  %v323_v42 = vpack.c.bf16 %v309_v41, %v308_v38  ;;  %v311_v44 = vld [vmem:[#allocation2 + $0x158] sm:$0xff] }
 0x1dd   :  { %v160_v48 = vadd.f32 %v159_v45, %v155_v47  ;;  %535 = vmatpush3.bf16.msra.mxu0 %v323_v42  ;;  %v324_v45 = vpack.c.bf16 %v311_v44, %v310_v43  ;;  %v313_v47 = vld [vmem:[#allocation2 + $0x168] sm:$0xff] }
 0x1de   :  { %536 = vmatprep.subr.bf16.mxu0 %v615_v0 }
 0x1df   :  { %v163_v49 = vmul.f32 1.4285715, %v160_v48  ;;  %v314_v48 = vld [vmem:[#allocation2 + $0x170] sm:$0xff] }
 0x1e1   :  { %v451_v28 = vpack.c.bf16 %v163_v49, %v163_v49  ;;  %537 = vmatpush3.bf16.msra.mxu0 %v324_v45  ;;  %v325_v49 = vpack.c.bf16 %v313_v47, %v312_v46 }
 0x1e2   :  { %538 = vmatprep.subr.bf16.mxu0 %v615_v0 }
 0x1e3   :  { %523 = vmatmul.mubr.msk.bf16.vlgmr.msra.gmra.mrb[0].mxu1 %vm450_vm2, %v451_v28  ;;  %v315_v28 = vld [vmem:[#allocation2 + $0x178] sm:$0xff] }
 0x1e5   :  { %539 = vmatpush3.bf16.msra.mxu0 %v325_v49 }
 0x1e6   :  { %540 = vmatprep.subr.bf16.mxu0 %v615_v0  ;;  %v453_v0 = vld [vmem:[%s767_s3 + $0x8] sm:$0xff] }
 0x1e7   :  { %vm296_vm3 = vcmp.ge.u32.totalorder %v453_v0, 1288490189 }
 0x1e8   :  { %vm455_vm4 = vmpackc.low %vm296_vm3, %vm296_vm3 }
 0x2b6   :  { %v231_v30 = vpop.f32.mrb[0].mxu1 }
 0x2b7   :  { %v232_v52 = vadd.f32 %v231_v30, %v196_v51  ;;  %v524_v53 = vpop.f32.mrb[1].mxu1  ;;  %v326_v51 = vpack.c.bf16 %v315_v28, %v314_v48 }
 0x2b8   :  { %v234_v54 = vpop.f32.mrb[2].mxu1 }
 0x2b9   :  { %v237_v55 = vmax.f32 %v232_v52, 0.0  ;;  %v525_v56 = vpop.f32.mrb[3].mxu1  ;;  %541 = vmatpush3.bf16.msra.mxu0 %v326_v51 }
 0x2bb   :  { %v238_v59 = vrot.slane %v237_v55, 4  ;;  %v245_v60 = vmul.f32 %v237_v55, %v237_v55 }
 0x2bd   :  { %v239_v61 = vadd.f32 %v238_v59, %v237_v55  ;;  %v246_v62 = vrot.slane %v245_v60, 4 }
 0x2bf   :  { %v240_v63 = vrot.slane %v239_v61, 2  ;;  %v247_v1 = vadd.f32 %v246_v62, %v245_v60 }
 0x2c1   :  { %v241_v2 = vadd.f32 %v240_v63, %v239_v61  ;;  %v248_v3 = vrot.slane %v247_v1, 2  ;;  %v287_v61 = vrot.slane %v719_v50, %v704_v39 }
 0x2c3   :  { %v242_v4 = vrot.slane %v241_v2, 1  ;;  %v249_v5 = vadd.f32 %v248_v3, %v247_v1 }
 0x2c5   :  { %v243_v6 = vadd.f32 %v242_v4, %v241_v2  ;;  %v250_v7 = vrot.slane %v249_v5, 1  ;;  %v292_v2 = vrot.slane %v719_v50, %v707_v40 }
 0x2c7   :  { %v244_v8 = vmul.f32 0.125, %v243_v6  ;;  %v251_v9 = vadd.f32 %v250_v7, %v249_v5  ;;  %v454_v7 = vld [vmem:[%s766_s2 + $0x10] sm:$0x1f] }
 0x2c8   :  { %v397_v36 = vrot.slane %v454_v7, %v687_v57  ;;  %v402_v41 = vrot.slane %v454_v7, %v690_v58  ;;  %v421_v57 = vrot.slane %v454_v7, %v704_v39  ;;  %v426_v58 = vrot.slane %v454_v7, %v707_v40 }
 0x2c9   :  { %v252_v10 = vmul.f32 0.125, %v251_v9  ;;  %v253_v11 = vmul.f32 %v244_v8, %v244_v8  ;;  %v256_v15 = vsub.f32 %v237_v55, %v244_v8  ;;  %v330_v8 = vrot.slane %v454_v7, %v677_v29 }
 0x2cb   :  { %v254_v12 = vsub.f32 %v252_v10, %v253_v11 }
 0x2cd   :  { %v255_v13 = vmax.f32 %v254_v12, 0.0 }
 0x2cf   :  { %v257_v14 = vadd.f32 1e-05, %v255_v13 }
 0x2d1   :  { %556 = vrsqrt.f32 %v257_v14 }
 0x2db   :  { %v557_v17 = vpop.eup %556 }
 0x2dc   :  { %v259_v18 = vmul.f32 %v557_v17, %v256_v15 }
 0x2de   :  { %v264_v20 = vmul.f32 %v263_v16, %v259_v18 }
 0x2e0   :  { %v269_v21 = vadd.f32 %v268_v19, %v264_v20 }
 0x2e2   :  { %270 = vadd.xlane.f32.xlu1 %v269_v21  ;;  %v273_v22 = vmul.f32 %v269_v21, %v269_v21 }
 0x2e6   :  { %274 = vadd.xlane.f32.xlu1 %v273_v22 }
 0x36f   :  { %v271_v30 = vpop.xlane.xlu1 %270 }
 0x370   :  { %v272_v52 = vmul.f32 0.03125, %v271_v30 }
 0x372   :  { %v277_v54 = vmul.f32 %v272_v52, %v272_v52  ;;  %v280_v62 = vsub.f32 %v269_v21, %v272_v52 }
 0x373   :  { %v275_v53 = vpop.xlane.xlu1 %274 }
 0x374   :  { %v276_v55 = vmul.f32 0.03125, %v275_v53 }
 0x376   :  { %v278_v56 = vsub.f32 %v276_v55, %v277_v54 }
 0x378   :  { %v279_v59 = vmax.f32 %v278_v56, 0.0  ;;  %v458_v56 = vld [vmem:[%s767_s3 + $0x10] sm:$0xff] }
 0x379   :  { %vm430_vm5 = vcmp.ge.u32.totalorder %v458_v56, 1288490189 }
 0x37a   :  { %v281_v60 = vadd.f32 1e-05, %v279_v59 }
 0x37c   :  { %558 = vrsqrt.f32 %v281_v60 }
 0x386   :  { %v559_v63 = vpop.eup %558 }
 0x387   :  { %v283_v1 = vmul.f32 %v559_v63, %v280_v62 }
 0x389   :  { %v288_v3 = vmul.f32 %v287_v61, %v283_v1 }
 0x38b   :  { %v293_v4 = vadd.f32 %v292_v2, %v288_v3 }
 0x38d   :  { %v297_v5 = vmul.f32 1.4285715, %v293_v4 }
 0x38f   :  { %v456_v6 = vpack.c.bf16 %v297_v5, %v297_v5 }
 0x391   :  { %543 = vmatmul.mubr.msk.bf16.vlgmr.msra.gmra.mrb[4].mxu0 %vm455_vm4, %v456_v6 }
 0x464   :  { %v365_v9 = vpop.f32.mrb[4].mxu0 }
 0x465   :  { %v366_v10 = vadd.f32 %v365_v9, %v330_v8  ;;  %v544_v50 = vpop.f32.mrb[5].mxu0 }
 0x466   :  { %v368_v11 = vpop.f32.mrb[6].mxu0 }
 0x467   :  { %v371_v12 = vmax.f32 %v366_v10, 0.0  ;;  %v545_v13 = vpop.f32.mrb[7].mxu0 }
 0x469   :  { %v372_v14 = vrot.slane %v371_v12, 4  ;;  %v379_v15 = vmul.f32 %v371_v12, %v371_v12 }
 0x46b   :  { %v373_v16 = vadd.f32 %v372_v14, %v371_v12  ;;  %v380_v17 = vrot.slane %v379_v15, 4 }
 0x46d   :  { %v374_v18 = vrot.slane %v373_v16, 2  ;;  %v381_v19 = vadd.f32 %v380_v17, %v379_v15 }
 0x46f   :  { %v375_v20 = vadd.f32 %v374_v18, %v373_v16  ;;  %v382_v21 = vrot.slane %v381_v19, 2 }
 0x471   :  { %v376_v22 = vrot.slane %v375_v20, 1  ;;  %v383_v23 = vadd.f32 %v382_v21, %v381_v19 }
 0x473   :  { %v377_v24 = vadd.f32 %v376_v22, %v375_v20  ;;  %v384_v25 = vrot.slane %v383_v23, 1 }
 0x475   :  { %v378_v26 = vmul.f32 0.125, %v377_v24  ;;  %v385_v29 = vadd.f32 %v384_v25, %v383_v23 }
 0x477   :  { %v386_v27 = vmul.f32 0.125, %v385_v29  ;;  %v387_v31 = vmul.f32 %v378_v26, %v378_v26  ;;  %v390_v35 = vsub.f32 %v371_v12, %v378_v26 }
 0x479   :  { %v388_v32 = vsub.f32 %v386_v27, %v387_v31 }
 0x47b   :  { %v389_v33 = vmax.f32 %v388_v32, 0.0 }
 0x47d   :  { %v391_v34 = vadd.f32 1e-05, %v389_v33 }
 0x47f   :  { %560 = vrsqrt.f32 %v391_v34 }
 0x489   :  { %v561_v37 = vpop.eup %560 }
 0x48a   :  { %v393_v38 = vmul.f32 %v561_v37, %v390_v35 }
 0x48c   :  { %v398_v42 = vmul.f32 %v397_v36, %v393_v38 }
 0x48e   :  { %v403_v43 = vadd.f32 %v402_v41, %v398_v42 }
 0x490   :  { %404 = vadd.xlane.f32.xlu0 %v403_v43  ;;  %v407_v44 = vmul.f32 %v403_v43, %v403_v43 }
 0x492   :  { %408 = vadd.xlane.f32.xlu1 %v407_v44 }
 0x51d   :  { %v405_v45 = vpop.xlane.xlu0 %404 }
 0x51e   :  { %v406_v46 = vmul.f32 0.0625, %v405_v45 }
 0x51f   :  { %v409_v47 = vpop.xlane.xlu1 %408 }
 0x520   :  { %v411_v48 = vmul.f32 %v406_v46, %v406_v46  ;;  %v410_v49 = vmul.f32 0.0625, %v409_v47  ;;  %v414_v52 = vsub.f32 %v403_v43, %v406_v46 }
 0x522   :  { %v412_v28 = vsub.f32 %v410_v49, %v411_v48 }
 0x524   :  { %v413_v51 = vmax.f32 %v412_v28, 0.0 }
 0x526   :  { %v415_v30 = vadd.f32 1e-05, %v413_v51 }
 0x528   :  { %562 = vrsqrt.f32 %v415_v30 }
 0x532   :  { %v563_v53 = vpop.eup %562 }
 0x533   :  { %v417_v54 = vmul.f32 %v563_v53, %v414_v52 }
 0x535   :  { %v422_v55 = vmul.f32 %v421_v57, %v417_v54 }
 0x537   :  { %v427_v59 = vadd.f32 %v426_v58, %v422_v55 }
 0x539   :  { %v431_v60 = vmul.f32 1.4285715, %v427_v59 }
 0x53b   :  { %v432_v61 = vsel %vm430_vm5, %v431_v60, 0.0 }
 0x53c   :  { %433 = vst [vmem:[#allocation5] sm:$0xff] %v432_v61 }
 0x53d   :  { %597 = shalt.err (!%p594_p12)
}
 0x53e   :  { %s598_s19 = scalar_lea.hbm %s768_s4, 128 }
 0x53f   :  { %p599_p13 = scmp.ne.s32.totalorder %s768_s4, %s598_s19  ;;  %p602_p0 = scmp.lt.u32.totalorder %s598_s19, %s768_s4 }
 0x541   :  { %p604_p1 = pnand %p602_p0, %p599_p13 }
 0x543   :  { %607 = shalt.err (!%p604_p1)
}
 0x544   :  { %443 = dma.vmem_to_hbm [thread:$0]  %s441_s15, 128, %s768_s4, [#allocation4]  }
 0x545   :  { %610 = dma.done.wait [#allocation4], 128  }
 0x546   :  { %611 = vsyncadd [#allocation4], 4294967168 }
 0x547   :  { %447 = vsyncpa [#allocation3], 1 }
 0x548   :  { %448 = vsyncpa [#allocation4], 1 }

</bundles_post_ra>
